<compile_context>
chip_gen: v7x
topology: tpu7x:2x2x1
jax: 0.10.0
libtpu: 0.0.40
codegen_flags: <defaults>
</compile_context>

<pallas_src>
import functools

import jax
import jax.numpy as jnp
from jax.experimental import pallas as pl
from jax.experimental.pallas import tpu as pltpu

K_RAW = 28 * 28        # 784
K_PAD = 896            # 7 * 128 — padded contraction dim
HID = 512
HEAD_PAD = 128         # lane-padded fused-head width
SIG_OFF = HEAD_PAD // 2


def _round_up(n, m):
    return (n + m - 1) // m * m


def vae_encoder_kernel(x_ref, w1_ref, b1_ref, wh_ref, bh_ref, eps_ref,
                       out_ref, *, latent_dim):
    # Hidden layer: (TB, K_PAD) bf16 @ (K_PAD, 512) bf16 -> f32, +bias, ReLU.
    h = jnp.dot(x_ref[...], w1_ref[...], preferred_element_type=jnp.float32)
    h = jnp.maximum(h + b1_ref[...], 0.0)

    # Fused heads: lanes [0, L) = mu linear, lanes [SIG_OFF, SIG_OFF+L) = sigma linear.
    head = jnp.dot(h.astype(jnp.bfloat16), wh_ref[...],
                   preferred_element_type=jnp.float32) + bh_ref[...]

    tb, head_pad = head.shape
    # Rotate by half the lane width so the sigma-linear columns land on lanes [0, L).
    # (A half-width rotation is direction-independent, so no roll-convention risk.)
    s_full = pltpu.roll(head, shift=head_pad // 2, axis=1)

    sigma = jnp.exp(s_full)                   # EUP; only lanes [0, L) are meaningful
    sig2 = sigma * sigma
    z_full = head + sigma * eps_ref[...]      # lanes [0, L): mu + sigma * eps

    col = jax.lax.broadcasted_iota(jnp.int32, (tb, head_pad), 1)
    in_latent = col < latent_dim

    # KL per row: -0.5 * sum_L(1 + log(sigma^2) - sigma^2 - mu^2) with
    # log(sigma^2) = 2 * s_lin computed analytically.
    term = jnp.where(in_latent, 1.0 + 2.0 * s_full - sig2 - head * head, 0.0)
    kl_row = -0.5 * jnp.sum(term, axis=-1, keepdims=True)

    # Lane-dense output slab: lanes [0, L) = z, lane L = per-row KL, rest 0.
    out_ref[...] = jnp.where(in_latent, z_full,
                             jnp.where(col == latent_dim, kl_row, 0.0))


def variational_encoder_forward(x, params, eps, *, block_b=256):
    """x: (B, 1, 28, 28) float32, eps: (B, L) float32.  Returns (z, kl)."""
    B = x.shape[0]
    L = params["wmu"].shape[1]
    assert L < SIG_OFF, "latent_dim must be < 64 for the fused-head layout"

    x_flat = x.reshape(B, -1)                      # torch.flatten(x, start_dim=1)

    tb = min(block_b, _round_up(B, 8))             # batch tile (multiple of 8)
    b_pad = _round_up(B, tb)
    grid = (b_pad // tb,)

    # Padded / fused operands (bf16 matmul inputs, f32 biases).
    x_p = jnp.zeros((b_pad, K_PAD), jnp.bfloat16)
    x_p = x_p.at[:B, :K_RAW].set(x_flat.astype(jnp.bfloat16))
    w1 = jnp.zeros((K_PAD, HID), jnp.bfloat16).at[:K_RAW, :].set(
        params["w1"].astype(jnp.bfloat16))
    b1 = params["b1"].astype(jnp.float32).reshape(1, HID)

    wh = jnp.zeros((HID, HEAD_PAD), jnp.bfloat16)
    wh = wh.at[:, :L].set(params["wmu"].astype(jnp.bfloat16))
    wh = wh.at[:, SIG_OFF:SIG_OFF + L].set(params["ws"].astype(jnp.bfloat16))
    bh = jnp.zeros((1, HEAD_PAD), jnp.float32)
    bh = bh.at[:, :L].set(params["bmu"].reshape(1, L))
    bh = bh.at[:, SIG_OFF:SIG_OFF + L].set(params["bs"].reshape(1, L))

    eps_p = jnp.zeros((b_pad, HEAD_PAD), jnp.float32).at[:B, :L].set(eps)

    kernel = functools.partial(vae_encoder_kernel, latent_dim=L)
    out = pl.pallas_call(
        kernel,
        out_shape=jax.ShapeDtypeStruct((b_pad, HEAD_PAD), jnp.float32),
        grid=grid,
        in_specs=[
            pl.BlockSpec((tb, K_PAD), lambda i: (i, 0)),        # x tile (pipelined)
            pl.BlockSpec((K_PAD, HID), lambda i: (0, 0)),       # W1 (VMEM-resident)
            pl.BlockSpec((1, HID), lambda i: (0, 0)),           # b1 (resident)
            pl.BlockSpec((HID, HEAD_PAD), lambda i: (0, 0)),    # fused heads (resident)
            pl.BlockSpec((1, HEAD_PAD), lambda i: (0, 0)),      # fused head bias
            pl.BlockSpec((tb, HEAD_PAD), lambda i: (i, 0)),     # eps tile
        ],
        out_specs=pl.BlockSpec((tb, HEAD_PAD), lambda i: (i, 0)),
        compiler_params=pltpu.CompilerParams(
            dimension_semantics=("parallel",)),
        cost_estimate=pl.CostEstimate(
            flops=2 * b_pad * (K_PAD * HID + HID * HEAD_PAD),
            transcendentals=b_pad * HEAD_PAD,
            bytes_accessed=(x_p.size * 2 + w1.size * 2 + wh.size * 2
                            + b1.size * 4 + bh.size * 4
                            + eps_p.size * 4 + b_pad * HEAD_PAD * 4)),
    )(x_p, w1, b1, wh, bh, eps_p)

    z = out[:B, :L]
    kl = jnp.sum(out[:B, L])
    return z, kl


def init_params(key, latent_dim=2):
    """Deterministic init mimicking nn.Linear's U(-1/sqrt(fan_in), 1/sqrt(fan_in))."""
    k1, k2, k3, k4, k5, k6 = jax.random.split(key, 6)
    d_in, d_hid = K_RAW, HID

    def lin(kw, kb, fan_in, fan_out):
        bound = 1.0 / jnp.sqrt(fan_in)
        w = jax.random.uniform(kw, (fan_in, fan_out), jnp.float32, -bound, bound)
        b = jax.random.uniform(kb, (1, fan_out), jnp.float32, -bound, bound)
        return w, b

    w1, b1 = lin(k1, k2, d_in, d_hid)
    wmu, bmu = lin(k3, k4, d_hid, latent_dim)
    ws, bs = lin(k5, k6, d_hid, latent_dim)
    return {"w1": w1, "b1": b1, "wmu": wmu, "bmu": bmu, "ws": ws, "bs": bs}


def reference_forward(x, params, eps):
    """Pure-JAX reference using the same bf16-input / f32-accumulate math."""
    B = x.shape[0]
    xf = x.reshape(B, -1).astype(jnp.bfloat16)
    h = jnp.maximum(
        jnp.dot(xf, params["w1"].astype(jnp.bfloat16),
                preferred_element_type=jnp.float32) + params["b1"], 0.0)
    hb = h.astype(jnp.bfloat16)
    mu = jnp.dot(hb, params["wmu"].astype(jnp.bfloat16),
                 preferred_element_type=jnp.float32) + params["bmu"]
    s_lin = jnp.dot(hb, params["ws"].astype(jnp.bfloat16),
                    preferred_element_type=jnp.float32) + params["bs"]
    sigma = jnp.exp(s_lin)
    z = mu + sigma * eps
    kl = -0.5 * jnp.sum(1.0 + 2.0 * s_lin - sigma ** 2 - mu ** 2)
    return z, kl


if __name__ == "__main__":
    key = jax.random.PRNGKey(0)
    kx, kp, ke = jax.random.split(key, 3)

    B, latent_dim = 2, 2
    x = jax.random.uniform(kx, (B, 1, 28, 28), jnp.float32)      # MNIST-like input
    params = init_params(kp, latent_dim=latent_dim)
    eps = jax.random.normal(ke, (B, latent_dim), jnp.float32)    # N(0,1) noise

    z, kl = variational_encoder_forward(x, params, eps)
    z = jax.block_until_ready(z)
    kl = jax.block_until_ready(kl)

    z_ref, kl_ref = reference_forward(x, params, eps)
    assert jnp.allclose(z, z_ref, atol=1e-2, rtol=1e-2), "z mismatch"
    assert jnp.allclose(kl, kl_ref, atol=1e-2, rtol=1e-2), "kl mismatch"

    print("KERNEL_OK")
</pallas_src>

<mosaic_0001>
module attributes {stable_mosaic.version = 11 : i64} {
  func.func @vae_encoder_kernel(%arg0: i32, %arg1: memref<8x896xbf16, #tpu.memory_space<vmem>>, %arg2: memref<896x512xbf16, #tpu.memory_space<vmem>>, %arg3: memref<1x512xf32, #tpu.memory_space<vmem>>, %arg4: memref<512x128xbf16, #tpu.memory_space<vmem>>, %arg5: memref<1x128xf32, #tpu.memory_space<vmem>>, %arg6: memref<8x128xf32, #tpu.memory_space<vmem>>, %arg7: memref<8x128xf32, #tpu.memory_space<vmem>>) attributes {dimension_semantics = [#tpu.dimension_semantics<parallel>], iteration_bounds = array<i64: 1>, scalar_prefetch = 0 : i64, scratch_operands = 0 : i64, tpu.core_type = #tpu.core_type<tc>, window_params = [{transform_indices = @transform_0, window_bounds = array<i64: 8, 896>}, {pipeline_mode = #tpu.pipeline_mode<synchronous>, transform_indices = @transform_1, window_bounds = array<i64: 896, 512>}, {pipeline_mode = #tpu.pipeline_mode<synchronous>, transform_indices = @transform_2, window_bounds = array<i64: 1, 512>}, {pipeline_mode = #tpu.pipeline_mode<synchronous>, transform_indices = @transform_3, window_bounds = array<i64: 512, 128>}, {pipeline_mode = #tpu.pipeline_mode<synchronous>, transform_indices = @transform_4, window_bounds = array<i64: 1, 128>}, {transform_indices = @transform_5, window_bounds = array<i64: 8, 128>}, {transform_indices = @transform_6, window_bounds = array<i64: 8, 128>}]} {
    %c0 = arith.constant 0 : index
    %c0_0 = arith.constant 0 : index
    %0 = vector.load %arg1[%c0, %c0_0] : memref<8x896xbf16, #tpu.memory_space<vmem>>, vector<8x896xbf16>
    %c0_1 = arith.constant 0 : index
    %c0_2 = arith.constant 0 : index
    %1 = vector.load %arg2[%c0_1, %c0_2] : memref<896x512xbf16, #tpu.memory_space<vmem>>, vector<896x512xbf16>
    %cst = arith.constant dense<0.000000e+00> : vector<8x512xf32>
    %2 = tpu.matmul %0, %1, %cst {dimension_numbers = #tpu.dot_dimension_numbers<[1], [0], [0], [1], [0, 0, 1, 1], [], []>} : vector<8x896xbf16>, vector<896x512xbf16>, vector<8x512xf32> -> vector<8x512xf32>
    %c0_3 = arith.constant 0 : index
    %c0_4 = arith.constant 0 : index
    %3 = vector.load %arg3[%c0_3, %c0_4] : memref<1x512xf32, #tpu.memory_space<vmem>>, vector<1x512xf32>
    %4 = vector.broadcast %3 : vector<1x512xf32> to vector<8x512xf32>
    %5 = arith.addf %2, %4 : vector<8x512xf32>
    %cst_5 = arith.constant 0.000000e+00 : f32
    %6 = vector.broadcast %cst_5 : f32 to vector<8x512xf32>
    %7 = arith.maximumf %5, %6 : vector<8x512xf32>
    %8 = arith.truncf %7 : vector<8x512xf32> to vector<8x512xbf16>
    %c0_6 = arith.constant 0 : index
    %c0_7 = arith.constant 0 : index
    %9 = vector.load %arg4[%c0_6, %c0_7] : memref<512x128xbf16, #tpu.memory_space<vmem>>, vector<512x128xbf16>
    %cst_8 = arith.constant dense<0.000000e+00> : vector<8x128xf32>
    %10 = tpu.matmul %8, %9, %cst_8 {dimension_numbers = #tpu.dot_dimension_numbers<[1], [0], [0], [1], [0, 0, 1, 1], [], []>} : vector<8x512xbf16>, vector<512x128xbf16>, vector<8x128xf32> -> vector<8x128xf32>
    %c0_9 = arith.constant 0 : index
    %c0_10 = arith.constant 0 : index
    %11 = vector.load %arg5[%c0_9, %c0_10] : memref<1x128xf32, #tpu.memory_space<vmem>>, vector<1x128xf32>
    %12 = vector.broadcast %11 : vector<1x128xf32> to vector<8x128xf32>
    %13 = arith.addf %10, %12 : vector<8x128xf32>
    %c64_i32 = arith.constant 64 : i32
    %14 = tpu.dynamic_rotate %13 by %c64_i32 dim 1 : vector<8x128xf32>, i32 -> vector<8x128xf32>
    %15 = math.exp %14 : vector<8x128xf32>
    %16 = arith.mulf %15, %15 : vector<8x128xf32>
    %c0_11 = arith.constant 0 : index
    %c0_12 = arith.constant 0 : index
    %17 = vector.load %arg6[%c0_11, %c0_12] : memref<8x128xf32, #tpu.memory_space<vmem>>, vector<8x128xf32>
    %18 = arith.mulf %15, %17 : vector<8x128xf32>
    %19 = arith.addf %13, %18 : vector<8x128xf32>
    %20 = tpu.iota {dimensions = array<i32: 1>} : vector<8x128xi32>
    %c2_i32 = arith.constant 2 : i32
    %21 = vector.broadcast %c2_i32 : i32 to vector<8x128xi32>
    %22 = arith.cmpi slt, %20, %21 : vector<8x128xi32>
    %cst_13 = arith.constant 2.000000e+00 : f32
    %23 = vector.broadcast %cst_13 : f32 to vector<8x128xf32>
    %24 = arith.mulf %23, %14 : vector<8x128xf32>
    %cst_14 = arith.constant 1.000000e+00 : f32
    %25 = vector.broadcast %cst_14 : f32 to vector<8x128xf32>
    %26 = arith.addf %25, %24 : vector<8x128xf32>
    %27 = arith.subf %26, %16 : vector<8x128xf32>
    %28 = arith.mulf %13, %13 : vector<8x128xf32>
    %29 = arith.subf %27, %28 : vector<8x128xf32>
    %cst_15 = arith.constant 0.000000e+00 : f32
    %30 = vector.broadcast %cst_15 : f32 to vector<8x128xf32>
    %31 = arith.select %22, %29, %30 : vector<8x128xi1>, vector<8x128xf32>
    %cst_16 = arith.constant dense<0.000000e+00> : vector<8xf32>
    %32 = vector.multi_reduction <add>, %31, %cst_16 [1] : vector<8x128xf32> to vector<8xf32>
    %33 = vector.shape_cast %32 : vector<8xf32> to vector<8x1xf32>
    %cst_17 = arith.constant -5.000000e-01 : f32
    %34 = vector.broadcast %cst_17 : f32 to vector<8x1xf32>
    %35 = arith.mulf %34, %33 : vector<8x1xf32>
    %c2_i32_18 = arith.constant 2 : i32
    %36 = vector.broadcast %c2_i32_18 : i32 to vector<8x128xi32>
    %37 = arith.cmpi eq, %20, %36 : vector<8x128xi32>
    %cst_19 = arith.constant 0.000000e+00 : f32
    %38 = vector.shape_cast %35 : vector<8x1xf32> to vector<8x1xf32>
    %39 = vector.broadcast %38 : vector<8x1xf32> to vector<8x128xf32>
    %40 = vector.broadcast %cst_19 : f32 to vector<8x128xf32>
    %41 = arith.select %37, %39, %40 : vector<8x128xi1>, vector<8x128xf32>
    %42 = arith.select %22, %19, %41 : vector<8x128xi1>, vector<8x128xf32>
    %c0_20 = arith.constant 0 : index
    %c0_21 = arith.constant 0 : index
    %43 = vector.load %arg7[%c0_20, %c0_21] : memref<8x128xf32, #tpu.memory_space<vmem>>, vector<8x128xf32>
    tpu.vector_store %arg7[%c0_20, %c0_21], %42 {strides = array<i32>} : memref<8x128xf32, #tpu.memory_space<vmem>>, vector<8x128xf32>,
    return
  }
  func.func @transform_0(%arg0: i32) -> (i32, i32) {
    %c0_i32 = arith.constant 0 : i32
    %c0_i32_0 = arith.constant 0 : i32
    return %arg0, %c0_i32 : i32, i32
  }
  func.func @transform_1(%arg0: i32) -> (i32, i32) {
    %c0_i32 = arith.constant 0 : i32
    %c0_i32_0 = arith.constant 0 : i32
    %c0_i32_1 = arith.constant 0 : i32
    return %c0_i32, %c0_i32_0 : i32, i32
  }
  func.func @transform_2(%arg0: i32) -> (i32, i32) {
    %c0_i32 = arith.constant 0 : i32
    %c0_i32_0 = arith.constant 0 : i32
    %c0_i32_1 = arith.constant 0 : i32
    return %c0_i32, %c0_i32_0 : i32, i32
  }
  func.func @transform_3(%arg0: i32) -> (i32, i32) {
    %c0_i32 = arith.constant 0 : i32
    %c0_i32_0 = arith.constant 0 : i32
    %c0_i32_1 = arith.constant 0 : i32
    return %c0_i32, %c0_i32_0 : i32, i32
  }
  func.func @transform_4(%arg0: i32) -> (i32, i32) {
    %c0_i32 = arith.constant 0 : i32
    %c0_i32_0 = arith.constant 0 : i32
    %c0_i32_1 = arith.constant 0 : i32
    return %c0_i32, %c0_i32_0 : i32, i32
  }
  func.func @transform_5(%arg0: i32) -> (i32, i32) {
    %c0_i32 = arith.constant 0 : i32
    %c0_i32_0 = arith.constant 0 : i32
    return %arg0, %c0_i32 : i32, i32
  }
  func.func @transform_6(%arg0: i32) -> (i32, i32) {
    %c0_i32 = arith.constant 0 : i32
    %c0_i32_0 = arith.constant 0 : i32
    return %arg0, %c0_i32 : i32, i32
  }
}

</mosaic_0001>

<bundles_post_ra>
// kernel: tpu_custom_call.1
= control target key start
LH: loop header
LB: loop body
LE: loop exit
PB: predicated region body
PF: predicated region fallthrough
CT: control target
= control target key end

     0   :  { %11 = vsyncpa [#allocation3], 0  ;;  %s3110_s0 = inlined_call_operand.hbm [shape: bf16[8,896], index: 0, kind: input, shape index: {}]   ;;  %s3111_s1 = inlined_call_operand.hbm [shape: bf16[896,512], index: 1, kind: input, shape index: {}]   ;;  %s3112_s2 = inlined_call_operand.vmem [shape: f32[1,512], index: 2, kind: input, shape index: {}]   ;;  %s3113_s3 = inlined_call_operand.hbm [shape: bf16[512,128], index: 3, kind: input, shape index: {}]   ;;  %s3114_s4 = inlined_call_operand.vmem [shape: f32[1,128], index: 4, kind: input, shape index: {}]   ;;  %s3115_s5 = inlined_call_operand.vmem [shape: f32[8,128], index: 5, kind: input, shape index: {}]   ;;  %s3116_s6 = inlined_call_operand.hbm [shape: f32[8,128], index: 6, kind: output, shape index: {}]  }
   0x1   :  { %12 = vsyncpa [#allocation6], 0 }
   0x2   :  { %13 = vsyncpa [#allocation4], 0  ;;  %s2994_s21 = smov [#allocation5]   ;;  %s2900_s25 = scalar_lea.hbm %s3111_s1, 28672 }
   0x3   :  { %s29_s22 = sshll.u32 %s2994_s21, 4  ;;  %p2901_p0 = scmp.ne.s32.totalorder %s3111_s1, %s2900_s25  ;;  %s30_s22 = int_to_ptr.vmem [resolvable:$true] %s29_s22 }
   0x4   :  { %p2904_p1 = scmp.lt.u32.totalorder %s2900_s25, %s3111_s1 }
   0x6   :  { %p2906_p2 = pnand %p2904_p1, %p2901_p0 }
   0x8   :  { %2909 = shalt.err (!%p2906_p2)
}
   0x9   :  { %s2910_s30 = scalar_lea.vmem %s30_s22, 28672  ;;  %p2915_p4 = scmp.lt.s32.totalorder %s30_s22, %s30_s22 }
   0xa   :  { %p2911_p3 = scmp.ne.s32.totalorder %s30_s22, %s2910_s30  ;;  %p2916_p5 = scmp.lt.s32.totalorder %s2910_s30, %s2910_s30 }
   0xc   :  { %p2917_p6 = por %p2916_p5, %p2915_p4 }
   0xe   :  { %p2918_p7 = pnand %p2917_p6, %p2911_p3 }
  0x10   :  { %2921 = shalt.err (!%p2918_p7)
}
  0x11   :  { %s2995_s7 = smov 256   ;;  %s2996_s8 = smov 16  }
  0x12   :  { %35 = dma.hbm_to_vmem [thread:$0]  %s3111_s1, 28672, %s30_s22, [#allocation6], %s2995_s7, %s2995_s7, %s2996_s8  }
  0x13   :  { %s2997_s11 = smov [#allocation2]   ;;  %s2998_s13 = smov [#allocation7]  }
  0x14   :  { %s20_s12 = sshll.u32 %s2997_s11, 4  ;;  %s43_s14 = sshll.u32 %s2998_s13, 4  ;;  %s21_s12 = int_to_ptr.vmem [resolvable:$true] %s20_s12  ;;  %s44_s14 = int_to_ptr.vmem [resolvable:$true] %s43_s14 }
  0x15   :  { %s2922_s17 = scalar_lea.hbm %s3110_s0, 448 }
  0x16   :  { %p2923_p8 = scmp.ne.s32.totalorder %s3110_s0, %s2922_s17  ;;  %p2926_p9 = scmp.lt.u32.totalorder %s2922_s17, %s3110_s0 }
  0x18   :  { %p2928_p10 = pnand %p2926_p9, %p2923_p8 }
  0x1a   :  { %2931 = shalt.err (!%p2928_p10)
}
  0x1b   :  { %s2932_s1 = scalar_lea.vmem %s21_s12, 448  ;;  %p2937_p12 = scmp.lt.s32.totalorder %s21_s12, %s21_s12 }
  0x1c   :  { %p2933_p11 = scmp.ne.s32.totalorder %s21_s12, %s2932_s1  ;;  %p2938_p13 = scmp.lt.s32.totalorder %s2932_s1, %s2932_s1 }
  0x1e   :  { %p2939_p0 = por %p2938_p13, %p2937_p12 }
  0x20   :  { %p2940_p1 = pnand %p2939_p0, %p2933_p11 }
  0x22   :  { %2943 = shalt.err (!%p2940_p1)
}
  0x23   :  { %23 = dma.hbm_to_vmem [thread:$0]  %s3110_s0, 448, %s21_s12, [#allocation3]  }
  0x24   :  { %s2944_s26 = scalar_lea.hbm %s3113_s3, 4096 }
  0x25   :  { %p2945_p2 = scmp.ne.s32.totalorder %s3113_s3, %s2944_s26  ;;  %p2948_p3 = scmp.lt.u32.totalorder %s2944_s26, %s3113_s3 }
  0x27   :  { %p2950_p4 = pnand %p2948_p3, %p2945_p2 }
  0x29   :  { %2953 = shalt.err (!%p2950_p4)
}
  0x2a   :  { %s2954_s7 = scalar_lea.vmem %s44_s14, 4096  ;;  %p2959_p6 = scmp.lt.s32.totalorder %s44_s14, %s44_s14 }
  0x2b   :  { %p2955_p5 = scmp.ne.s32.totalorder %s44_s14, %s2954_s7  ;;  %p2960_p7 = scmp.lt.s32.totalorder %s2954_s7, %s2954_s7 }
  0x2d   :  { %p2961_p8 = por %p2960_p7, %p2959_p6 }
  0x2f   :  { %p2962_p9 = pnand %p2961_p8, %p2955_p5 }
  0x31   :  { %2965 = shalt.err (!%p2962_p9)
}
  0x32   :  { %s2999_s0 = smov 64   ;;  %s3000_s8 = smov 4  }
  0x33   :  { %49 = dma.hbm_to_vmem [thread:$0]  %s3113_s3, 4096, %s44_s14, [#allocation6], %s2999_s0, %s2999_s0, %s3000_s8  }
  0x34   :  { %2988 = dma.done.wait [#allocation3], 448  }
  0x35   :  { %2989 = vsyncadd [#allocation3], 4294966848 }
  0x36   :  { %2990 = dma.done.wait [#allocation6], 32768  }
  0x37   :  { %2991 = vsyncadd [#allocation6], 4294934528  ;;  %v2523_v0 = vld [vmem:[#allocation5 + $0x4] ss:$16 sps:$4 sm:$0xff]   ;;  %v2525_v1 = vld [vmem:[#allocation5 + $0xc] ss:$16 sps:$4 sm:$0xff]  }
  0x38   :  { %1459 = vmatprep.subr.bf16.mxu0 %v2523_v0  ;;  %v2527_v2 = vld [vmem:[#allocation5] ss:$16 sps:$4 sm:$0xff]   ;;  %v2528_v3 = vld [vmem:[#allocation5 + $0x8] ss:$16 sps:$4 sm:$0xff]   ;;  %1623 = vmatprep.subr.bf16.mxu1 %v2525_v1  ;;  %v2529_v4 = vld [vmem:[#allocation5 + $0x24] ss:$16 sps:$4 sm:$0xff]  }
  0x39   :  { %1460 = vmatpush1.bf16.msra.mxu0 %v2527_v2  ;;  %1624 = vmatpush1.bf16.msra.mxu1 %v2528_v3  ;;  %v2531_v5 = vld [vmem:[#allocation5 + $0x2c] ss:$16 sps:$4 sm:$0xff]   ;;  %v2533_v6 = vld [vmem:[#allocation5 + $0x20] ss:$16 sps:$4 sm:$0xff]   ;;  %v2534_v7 = vld [vmem:[#allocation5 + $0x28] ss:$16 sps:$4 sm:$0xff]  }
  0x3a   :  { %1461 = vmatprep.subr.bf16.mxu0 %v2529_v4  ;;  %1625 = vmatprep.subr.bf16.mxu1 %v2531_v5  ;;  %v2535_v8 = vld [vmem:[#allocation5 + $0x44] ss:$16 sps:$4 sm:$0xff]   ;;  %v2537_v9 = vld [vmem:[#allocation5 + $0x4c] ss:$16 sps:$4 sm:$0xff]   ;;  %v2539_v10 = vld [vmem:[#allocation5 + $0x40] ss:$16 sps:$4 sm:$0xff]  }
  0x3b   :  { %v2540_v11 = vld [vmem:[#allocation5 + $0x48] ss:$16 sps:$4 sm:$0xff]   ;;  %v2541_v12 = vld [vmem:[#allocation5 + $0x64] ss:$16 sps:$4 sm:$0xff]   ;;  %v2543_v13 = vld [vmem:[#allocation5 + $0x6c] ss:$16 sps:$4 sm:$0xff]  }
  0x3c   :  { %v2545_v14 = vld [vmem:[#allocation5 + $0x60] ss:$16 sps:$4 sm:$0xff]   ;;  %v2546_v15 = vld [vmem:[#allocation5 + $0x68] ss:$16 sps:$4 sm:$0xff]   ;;  %v2547_v16 = vld [vmem:[#allocation5 + $0x84] ss:$16 sps:$4 sm:$0xff]  }
  0x3d   :  { %1462 = vmatpush1.bf16.msra.mxu0 %v2533_v6  ;;  %1626 = vmatpush1.bf16.msra.mxu1 %v2534_v7  ;;  %v2549_v17 = vld [vmem:[#allocation5 + $0x8c] ss:$16 sps:$4 sm:$0xff]   ;;  %v2551_v18 = vld [vmem:[#allocation5 + $0x80] ss:$16 sps:$4 sm:$0xff]   ;;  %v2552_v19 = vld [vmem:[#allocation5 + $0x88] ss:$16 sps:$4 sm:$0xff]  }
  0x3e   :  { %1463 = vmatprep.subr.bf16.mxu0 %v2535_v8  ;;  %1627 = vmatprep.subr.bf16.mxu1 %v2537_v9  ;;  %v2553_v20 = vld [vmem:[#allocation5 + $0xa4] ss:$16 sps:$4 sm:$0xff]   ;;  %v2555_v21 = vld [vmem:[#allocation5 + $0xac] ss:$16 sps:$4 sm:$0xff]   ;;  %v2557_v22 = vld [vmem:[#allocation5 + $0xa0] ss:$16 sps:$4 sm:$0xff]  }
  0x3f   :  { %v2558_v23 = vld [vmem:[#allocation5 + $0xa8] ss:$16 sps:$4 sm:$0xff]   ;;  %v2559_v24 = vld [vmem:[#allocation5 + $0xc4] ss:$16 sps:$4 sm:$0xff]   ;;  %v2561_v25 = vld [vmem:[#allocation5 + $0xcc] ss:$16 sps:$4 sm:$0xff]  }
  0x40   :  { %v2563_v26 = vld [vmem:[#allocation5 + $0xc0] ss:$16 sps:$4 sm:$0xff]   ;;  %v2564_v27 = vld [vmem:[#allocation5 + $0xc8] ss:$16 sps:$4 sm:$0xff]   ;;  %v2565_v28 = vld [vmem:[#allocation5 + $0xe4] ss:$16 sps:$4 sm:$0xff]  }
  0x41   :  { %1464 = vmatpush1.bf16.msra.mxu0 %v2539_v10  ;;  %1628 = vmatpush1.bf16.msra.mxu1 %v2540_v11  ;;  %v2567_v29 = vld [vmem:[#allocation5 + $0xec] ss:$16 sps:$4 sm:$0xff]   ;;  %v2569_v30 = vld [vmem:[#allocation5 + $0xe0] ss:$16 sps:$4 sm:$0xff]   ;;  %v2570_v31 = vld [vmem:[#allocation5 + $0xe8] ss:$16 sps:$4 sm:$0xff]  }
  0x42   :  { %1465 = vmatprep.subr.bf16.mxu0 %v2541_v12  ;;  %1629 = vmatprep.subr.bf16.mxu1 %v2543_v13  ;;  %v2571_v32 = vld [vmem:[#allocation5 + $0x104] ss:$16 sps:$4 sm:$0xff]   ;;  %v2573_v33 = vld [vmem:[#allocation5 + $0x10c] ss:$16 sps:$4 sm:$0xff]   ;;  %v2575_v34 = vld [vmem:[#allocation5 + $0x100] ss:$16 sps:$4 sm:$0xff]  }
  0x43   :  { %v2576_v35 = vld [vmem:[#allocation5 + $0x108] ss:$16 sps:$4 sm:$0xff]   ;;  %v2577_v36 = vld [vmem:[#allocation5 + $0x124] ss:$16 sps:$4 sm:$0xff]   ;;  %v2579_v37 = vld [vmem:[#allocation5 + $0x12c] ss:$16 sps:$4 sm:$0xff]  }
  0x44   :  { %v2581_v38 = vld [vmem:[#allocation5 + $0x120] ss:$16 sps:$4 sm:$0xff]   ;;  %v2582_v39 = vld [vmem:[#allocation5 + $0x128] ss:$16 sps:$4 sm:$0xff]   ;;  %v2583_v40 = vld [vmem:[#allocation5 + $0x144] ss:$16 sps:$4 sm:$0xff]  }
  0x45   :  { %1466 = vmatpush1.bf16.msra.mxu0 %v2545_v14  ;;  %1630 = vmatpush1.bf16.msra.mxu1 %v2546_v15  ;;  %v2585_v41 = vld [vmem:[#allocation5 + $0x14c] ss:$16 sps:$4 sm:$0xff]   ;;  %v2587_v42 = vld [vmem:[#allocation5 + $0x140] ss:$16 sps:$4 sm:$0xff]   ;;  %v2588_v43 = vld [vmem:[#allocation5 + $0x148] ss:$16 sps:$4 sm:$0xff]  }
  0x46   :  { %1467 = vmatprep.subr.bf16.mxu0 %v2547_v16  ;;  %1631 = vmatprep.subr.bf16.mxu1 %v2549_v17  ;;  %v2589_v44 = vld [vmem:[#allocation5 + $0x164] ss:$16 sps:$4 sm:$0xff]   ;;  %v2591_v45 = vld [vmem:[#allocation5 + $0x16c] ss:$16 sps:$4 sm:$0xff]   ;;  %v2593_v47 = vld [vmem:[#allocation5 + $0x160] ss:$16 sps:$4 sm:$0xff]  }
  0x47   :  { %v64_v46 = vld [vmem:[#allocation2] sm:$0xff]  ;;  %v2597_v51 = vld [vmem:[#allocation5 + $0x18c] ss:$16 sps:$4 sm:$0xff]   ;;  %v2599_v52 = vld [vmem:[#allocation5 + $0x180] ss:$16 sps:$4 sm:$0xff]   ;;  %s3002_s14 = smov [#allocation8]  }
  0x48   :  { %v2179_v48 = vcombine.high %v64_v46, %v64_v46  ;;  %v2594_v49 = vld [vmem:[#allocation5 + $0x168] ss:$16 sps:$4 sm:$0xff]   ;;  %v2595_v50 = vld [vmem:[#allocation5 + $0x184] ss:$16 sps:$4 sm:$0xff]   ;;  %v2603_v55 = vld [vmem:[#allocation5 + $0x1ac] ss:$16 sps:$4 sm:$0xff]   ;;  %v2178_v4 = vcombine.low %v64_v46, %v64_v46 }
  0x49   :  { %1468 = vmatpush1.bf16.msra.mxu0 %v2551_v18  ;;  %1632 = vmatpush1.bf16.msra.mxu1 %v2552_v19  ;;  %v2600_v53 = vld [vmem:[#allocation5 + $0x188] ss:$16 sps:$4 sm:$0xff]   ;;  %v2601_v54 = vld [vmem:[#allocation5 + $0x1a4] ss:$16 sps:$4 sm:$0xff]   ;;  %v2605_v56 = vld [vmem:[#allocation5 + $0x1a0] ss:$16 sps:$4 sm:$0xff]  }
  0x4a   :  { %1469 = vmatprep.subr.bf16.mxu0 %v2553_v20  ;;  %1633 = vmatprep.subr.bf16.mxu1 %v2555_v21  ;;  %v2606_v57 = vld [vmem:[#allocation5 + $0x1a8] ss:$16 sps:$4 sm:$0xff]   ;;  %v2607_v58 = vld [vmem:[#allocation5 + $0x1c4] ss:$16 sps:$4 sm:$0xff]   ;;  %v2609_v59 = vld [vmem:[#allocation5 + $0x1cc] ss:$16 sps:$4 sm:$0xff]  }
  0x4b   :  { %1491 = vmatprep.mubr.bf16.mxu0 %v2179_v48  ;;  %1655 = vmatprep.mubr.bf16.mxu1 %v2179_v48  ;;  %v2611_v60 = vld [vmem:[#allocation5 + $0x1c0] ss:$16 sps:$4 sm:$0xff]   ;;  %v2612_v61 = vld [vmem:[#allocation5 + $0x1c8] ss:$16 sps:$4 sm:$0xff]   ;;  %v2613_v62 = vld [vmem:[#allocation5 + $0x1e4] ss:$16 sps:$4 sm:$0xff]  }
  0x4c   :  { %v2615_v63 = vld [vmem:[#allocation5 + $0x1ec] ss:$16 sps:$4 sm:$0xff]   ;;  %v2617_v0 = vld [vmem:[#allocation5 + $0x1e0] ss:$16 sps:$4 sm:$0xff]   ;;  %v2618_v1 = vld [vmem:[#allocation5 + $0x1e8] ss:$16 sps:$4 sm:$0xff]  }
  0x4d   :  { %1470 = vmatpush1.bf16.msra.mxu0 %v2557_v22  ;;  %1634 = vmatpush1.bf16.msra.mxu1 %v2558_v23  ;;  %v2623_v2 = vld [vmem:[#allocation5 + $0x204] ss:$16 sps:$4 sm:$0xff]   ;;  %v2626_v3 = vld [vmem:[#allocation5 + $0x20c] ss:$16 sps:$4 sm:$0xff]   ;;  %v2621_v5 = vld [vmem:[#allocation5 + $0x200] ss:$16 sps:$4 sm:$0xff]  }
  0x4e   :  { %1471 = vmatprep.subr.bf16.mxu0 %v2559_v24  ;;  %1635 = vmatprep.subr.bf16.mxu1 %v2561_v25  ;;  %v2624_v6 = vld [vmem:[#allocation5 + $0x208] ss:$16 sps:$4 sm:$0xff]   ;;  %v2629_v7 = vld [vmem:[#allocation5 + $0x224] ss:$16 sps:$4 sm:$0xff]   ;;  %v2632_v8 = vld [vmem:[#allocation5 + $0x22c] ss:$16 sps:$4 sm:$0xff]  }
  0x4f   :  { %v2627_v9 = vld [vmem:[#allocation5 + $0x220] ss:$16 sps:$4 sm:$0xff]   ;;  %v2630_v10 = vld [vmem:[#allocation5 + $0x228] ss:$16 sps:$4 sm:$0xff]   ;;  %v2635_v11 = vld [vmem:[#allocation5 + $0x244] ss:$16 sps:$4 sm:$0xff]  }
  0x50   :  { %v2638_v12 = vld [vmem:[#allocation5 + $0x24c] ss:$16 sps:$4 sm:$0xff]   ;;  %v2633_v13 = vld [vmem:[#allocation5 + $0x240] ss:$16 sps:$4 sm:$0xff]   ;;  %v2636_v14 = vld [vmem:[#allocation5 + $0x248] ss:$16 sps:$4 sm:$0xff]  }
  0x51   :  { %1472 = vmatpush1.bf16.msra.mxu0 %v2563_v26  ;;  %1636 = vmatpush1.bf16.msra.mxu1 %v2564_v27  ;;  %v2641_v15 = vld [vmem:[#allocation5 + $0x264] ss:$16 sps:$4 sm:$0xff]   ;;  %v2644_v16 = vld [vmem:[#allocation5 + $0x26c] ss:$16 sps:$4 sm:$0xff]   ;;  %v2639_v17 = vld [vmem:[#allocation5 + $0x260] ss:$16 sps:$4 sm:$0xff]  }
  0x52   :  { %1473 = vmatprep.subr.bf16.mxu0 %v2565_v28  ;;  %1637 = vmatprep.subr.bf16.mxu1 %v2567_v29  ;;  %v2642_v18 = vld [vmem:[#allocation5 + $0x268] ss:$16 sps:$4 sm:$0xff]   ;;  %v2647_v19 = vld [vmem:[#allocation5 + $0x284] ss:$16 sps:$4 sm:$0xff]   ;;  %v2650_v20 = vld [vmem:[#allocation5 + $0x28c] ss:$16 sps:$4 sm:$0xff]  }
  0x53   :  { %v2645_v21 = vld [vmem:[#allocation5 + $0x280] ss:$16 sps:$4 sm:$0xff]   ;;  %v2648_v22 = vld [vmem:[#allocation5 + $0x288] ss:$16 sps:$4 sm:$0xff]   ;;  %v2653_v23 = vld [vmem:[#allocation5 + $0x2a4] ss:$16 sps:$4 sm:$0xff]  }
  0x54   :  { %v2656_v24 = vld [vmem:[#allocation5 + $0x2ac] ss:$16 sps:$4 sm:$0xff]   ;;  %v2651_v25 = vld [vmem:[#allocation5 + $0x2a0] ss:$16 sps:$4 sm:$0xff]   ;;  %v2654_v26 = vld [vmem:[#allocation5 + $0x2a8] ss:$16 sps:$4 sm:$0xff]  }
  0x55   :  { %1474 = vmatpush1.bf16.msra.mxu0 %v2569_v30  ;;  %1638 = vmatpush1.bf16.msra.mxu1 %v2570_v31  ;;  %v2659_v27 = vld [vmem:[#allocation5 + $0x2c4] ss:$16 sps:$4 sm:$0xff]   ;;  %v2662_v28 = vld [vmem:[#allocation5 + $0x2cc] ss:$16 sps:$4 sm:$0xff]   ;;  %v2657_v31 = vld [vmem:[#allocation5 + $0x2c0] ss:$16 sps:$4 sm:$0xff]  }
  0x56   :  { %1475 = vmatprep.subr.bf16.mxu0 %v2571_v32  ;;  %1639 = vmatprep.subr.bf16.mxu1 %v2573_v33  ;;  %v3076_v29 = vld [vmem:[#allocation2 + $0x8] sm:$0xff]  ;;  %v2660_v32 = vld [vmem:[#allocation5 + $0x2c8] ss:$16 sps:$4 sm:$0xff]   ;;  %v2665_v33 = vld [vmem:[#allocation5 + $0x2e4] ss:$16 sps:$4 sm:$0xff]   ;;  %s2168_s15 = sshll.u32 %s3002_s14, 4  ;;  %s2169_s15 = int_to_ptr.vmem [resolvable:$true] %s2168_s15 }
  0x57   :  { %v2181_v30 = vcombine.high %v3076_v29, %v3076_v29  ;;  %v2686_v46 = vld [vmem:[#allocation5 + $0x34c] ss:$16 sps:$4 sm:$0xff]   ;;  %v2684_v48 = vld [vmem:[#allocation5 + $0x348] ss:$16 sps:$4 sm:$0xff]   ;;  %s2966_s16 = scalar_lea.vmem %s2169_s15, 128  ;;  %p2971_p11 = scmp.lt.s32.totalorder %s2169_s15, %s2169_s15 }
  0x58   :  { %p2967_p10 = scmp.ne.s32.totalorder %s2169_s15, %s2966_s16  ;;  %p2972_p12 = scmp.lt.s32.totalorder %s2966_s16, %s2966_s16 }
  0x59   :  { %1476 = vmatpush1.bf16.msra.mxu0 %v2575_v34  ;;  %1640 = vmatpush1.bf16.msra.mxu1 %v2576_v35  ;;  %v2668_v34 = vld [vmem:[#allocation5 + $0x2ec] ss:$16 sps:$4 sm:$0xff]   ;;  %v2663_v35 = vld [vmem:[#allocation5 + $0x2e0] ss:$16 sps:$4 sm:$0xff]  }
  0x5a   :  { %1477 = vmatprep.subr.bf16.mxu0 %v2577_v36  ;;  %1641 = vmatprep.subr.bf16.mxu1 %v2579_v37  ;;  %v2666_v36 = vld [vmem:[#allocation5 + $0x2e8] ss:$16 sps:$4 sm:$0xff]   ;;  %v2671_v37 = vld [vmem:[#allocation5 + $0x304] ss:$16 sps:$4 sm:$0xff]   ;;  %p2973_p13 = por %p2972_p12, %p2971_p11 }
  0x5c   :  { %p2974_p0 = pnand %p2973_p13, %p2967_p10 }
  0x5d   :  { %1478 = vmatpush1.bf16.msra.mxu0 %v2581_v38  ;;  %1642 = vmatpush1.bf16.msra.mxu1 %v2582_v39  ;;  %v2674_v38 = vld [vmem:[#allocation5 + $0x30c] ss:$16 sps:$4 sm:$0xff]   ;;  %v2669_v39 = vld [vmem:[#allocation5 + $0x300] ss:$16 sps:$4 sm:$0xff]  }
  0x5e   :  { %1479 = vmatprep.subr.bf16.mxu0 %v2583_v40  ;;  %1643 = vmatprep.subr.bf16.mxu1 %v2585_v41  ;;  %v2672_v40 = vld [vmem:[#allocation5 + $0x308] ss:$16 sps:$4 sm:$0xff]   ;;  %v2677_v41 = vld [vmem:[#allocation5 + $0x324] ss:$16 sps:$4 sm:$0xff]  }
  0x61   :  { %1480 = vmatpush1.bf16.msra.mxu0 %v2587_v42  ;;  %1644 = vmatpush1.bf16.msra.mxu1 %v2588_v43  ;;  %v2680_v42 = vld [vmem:[#allocation5 + $0x32c] ss:$16 sps:$4 sm:$0xff]   ;;  %v2675_v43 = vld [vmem:[#allocation5 + $0x320] ss:$16 sps:$4 sm:$0xff]  }
  0x62   :  { %1481 = vmatprep.subr.bf16.mxu0 %v2589_v44  ;;  %1645 = vmatprep.subr.bf16.mxu1 %v2591_v45  ;;  %v2678_v44 = vld [vmem:[#allocation5 + $0x328] ss:$16 sps:$4 sm:$0xff]   ;;  %v2683_v45 = vld [vmem:[#allocation5 + $0x344] ss:$16 sps:$4 sm:$0xff]  }
  0x65   :  { %1482 = vmatpush1.bf16.msra.mxu0 %v2593_v47  ;;  %1646 = vmatpush1.bf16.msra.mxu1 %v2594_v49  ;;  %v2681_v47 = vld [vmem:[#allocation5 + $0x340] ss:$16 sps:$4 sm:$0xff]   ;;  %v2689_v49 = vld [vmem:[#allocation5 + $0x364] ss:$16 sps:$4 sm:$0xff]  }
  0x66   :  { %1483 = vmatprep.subr.bf16.mxu0 %v2595_v50  ;;  %1647 = vmatprep.subr.bf16.mxu1 %v2597_v51  ;;  %v2692_v50 = vld [vmem:[#allocation5 + $0x36c] ss:$16 sps:$4 sm:$0xff]   ;;  %v2687_v51 = vld [vmem:[#allocation5 + $0x360] ss:$16 sps:$4 sm:$0xff]  }
  0x69   :  { %1484 = vmatpush1.bf16.msra.mxu0 %v2599_v52  ;;  %1648 = vmatpush1.bf16.msra.mxu1 %v2600_v53  ;;  %v2690_v52 = vld [vmem:[#allocation5 + $0x368] ss:$16 sps:$4 sm:$0xff]   ;;  %v2695_v53 = vld [vmem:[#allocation5 + $0x384] ss:$16 sps:$4 sm:$0xff]  }
  0x6a   :  { %1485 = vmatprep.subr.bf16.mxu0 %v2601_v54  ;;  %1649 = vmatprep.subr.bf16.mxu1 %v2603_v55  ;;  %v2698_v54 = vld [vmem:[#allocation5 + $0x38c] ss:$16 sps:$4 sm:$0xff]   ;;  %v2693_v55 = vld [vmem:[#allocation5 + $0x380] ss:$16 sps:$4 sm:$0xff]  }
  0x6d   :  { %1486 = vmatpush1.bf16.msra.mxu0 %v2605_v56  ;;  %1650 = vmatpush1.bf16.msra.mxu1 %v2606_v57  ;;  %v2696_v56 = vld [vmem:[#allocation5 + $0x388] ss:$16 sps:$4 sm:$0xff]   ;;  %v2701_v57 = vld [vmem:[#allocation5 + $0x3a4] ss:$16 sps:$4 sm:$0xff]  }
  0x6e   :  { %1487 = vmatprep.subr.bf16.mxu0 %v2607_v58  ;;  %1651 = vmatprep.subr.bf16.mxu1 %v2609_v59  ;;  %v2704_v58 = vld [vmem:[#allocation5 + $0x3ac] ss:$16 sps:$4 sm:$0xff]   ;;  %v2699_v59 = vld [vmem:[#allocation5 + $0x3a0] ss:$16 sps:$4 sm:$0xff]  }
  0x71   :  { %1488 = vmatpush1.bf16.msra.mxu0 %v2611_v60  ;;  %1652 = vmatpush1.bf16.msra.mxu1 %v2612_v61  ;;  %v2702_v60 = vld [vmem:[#allocation5 + $0x3a8] ss:$16 sps:$4 sm:$0xff]   ;;  %v2707_v61 = vld [vmem:[#allocation5 + $0x3c4] ss:$16 sps:$4 sm:$0xff]  }
  0x72   :  { %1489 = vmatprep.subr.bf16.mxu0 %v2613_v62  ;;  %1653 = vmatprep.subr.bf16.mxu1 %v2615_v63  ;;  %v2710_v62 = vld [vmem:[#allocation5 + $0x3cc] ss:$16 sps:$4 sm:$0xff]   ;;  %v2705_v63 = vld [vmem:[#allocation5 + $0x3c0] ss:$16 sps:$4 sm:$0xff]  }
  0x75   :  { %1490 = vmatpush1.bf16.msra.mxu0 %v2617_v0  ;;  %1654 = vmatpush1.bf16.msra.mxu1 %v2618_v1  ;;  %v2708_v0 = vld [vmem:[#allocation5 + $0x3c8] ss:$16 sps:$4 sm:$0xff]   ;;  %v2713_v1 = vld [vmem:[#allocation5 + $0x3e4] ss:$16 sps:$4 sm:$0xff]  }
  0x76   :  { %1500 = vmatprep.subr.bf16.mxu0 %v2623_v2  ;;  %1664 = vmatprep.subr.bf16.mxu1 %v2626_v3  ;;  %v2716_v2 = vld [vmem:[#allocation5 + $0x3ec] ss:$16 sps:$4 sm:$0xff]   ;;  %v2711_v3 = vld [vmem:[#allocation5 + $0x3e0] ss:$16 sps:$4 sm:$0xff]  }
  0x78   :  { %1492 = vmatmul.mubr.bf16.vlgmr.msra.gmra.mrb[0].mxu0 %v2178_v4  ;;  %1656 = vmatmul.mubr.bf16.vlgmr.msra.gmra.mrb[0].mxu1 %v2178_v4  ;;  %v2714_v4 = vld [vmem:[#allocation5 + $0x3e8] ss:$16 sps:$4 sm:$0xff]  }
  0x79   :  { %1501 = vmatpush1.bf16.msra.mxu0 %v2621_v5  ;;  %1665 = vmatpush1.bf16.msra.mxu1 %v2624_v6  ;;  %v2721_v5 = vld [vmem:[#allocation5 + $0x404] ss:$16 sps:$4 sm:$0xff]   ;;  %v2724_v6 = vld [vmem:[#allocation5 + $0x40c] ss:$16 sps:$4 sm:$0xff]  }
  0x7a   :  { %1502 = vmatprep.subr.bf16.mxu0 %v2629_v7  ;;  %1666 = vmatprep.subr.bf16.mxu1 %v2632_v8  ;;  %v2180_v7 = vcombine.low %v3076_v29, %v3076_v29  ;;  %v2719_v8 = vld [vmem:[#allocation5 + $0x400] ss:$16 sps:$4 sm:$0xff]   ;;  %v2754_v29 = vld [vmem:[#allocation5 + $0x4ac] ss:$16 sps:$4 sm:$0xff]  }
  0x7b   :  { %1532 = vmatprep.mubr.bf16.mxu0 %v2181_v30  ;;  %1696 = vmatprep.mubr.bf16.mxu1 %v2181_v30  ;;  %v2749_v30 = vld [vmem:[#allocation5 + $0x4a0] ss:$16 sps:$4 sm:$0xff]  }
  0x7d   :  { %1503 = vmatpush1.bf16.msra.mxu0 %v2627_v9  ;;  %1667 = vmatpush1.bf16.msra.mxu1 %v2630_v10  ;;  %v2722_v9 = vld [vmem:[#allocation5 + $0x408] ss:$16 sps:$4 sm:$0xff]   ;;  %v2727_v10 = vld [vmem:[#allocation5 + $0x424] ss:$16 sps:$4 sm:$0xff]  }
  0x7e   :  { %1504 = vmatprep.subr.bf16.mxu0 %v2635_v11  ;;  %1668 = vmatprep.subr.bf16.mxu1 %v2638_v12  ;;  %v3082_v11 = vld [vmem:[#allocation2 + $0x10] sm:$0xff]  ;;  %v2730_v12 = vld [vmem:[#allocation5 + $0x42c] ss:$16 sps:$4 sm:$0xff]  }
  0x81   :  { %1505 = vmatpush1.bf16.msra.mxu0 %v2633_v13  ;;  %1669 = vmatpush1.bf16.msra.mxu1 %v2636_v14  ;;  %v2183_v13 = vcombine.high %v3082_v11, %v3082_v11  ;;  %v2725_v14 = vld [vmem:[#allocation5 + $0x420] ss:$16 sps:$4 sm:$0xff]  }
  0x82   :  { %1506 = vmatprep.subr.bf16.mxu0 %v2641_v15  ;;  %1670 = vmatprep.subr.bf16.mxu1 %v2644_v16  ;;  %v2728_v15 = vld [vmem:[#allocation5 + $0x428] ss:$16 sps:$4 sm:$0xff]   ;;  %v2733_v16 = vld [vmem:[#allocation5 + $0x444] ss:$16 sps:$4 sm:$0xff]  }
  0x85   :  { %1507 = vmatpush1.bf16.msra.mxu0 %v2639_v17  ;;  %1671 = vmatpush1.bf16.msra.mxu1 %v2642_v18  ;;  %v2736_v17 = vld [vmem:[#allocation5 + $0x44c] ss:$16 sps:$4 sm:$0xff]   ;;  %v2731_v18 = vld [vmem:[#allocation5 + $0x440] ss:$16 sps:$4 sm:$0xff]  }
  0x86   :  { %1508 = vmatprep.subr.bf16.mxu0 %v2647_v19  ;;  %1672 = vmatprep.subr.bf16.mxu1 %v2650_v20  ;;  %v2734_v19 = vld [vmem:[#allocation5 + $0x448] ss:$16 sps:$4 sm:$0xff]   ;;  %v2739_v20 = vld [vmem:[#allocation5 + $0x464] ss:$16 sps:$4 sm:$0xff]  }
  0x89   :  { %1509 = vmatpush1.bf16.msra.mxu0 %v2645_v21  ;;  %1673 = vmatpush1.bf16.msra.mxu1 %v2648_v22  ;;  %v2742_v21 = vld [vmem:[#allocation5 + $0x46c] ss:$16 sps:$4 sm:$0xff]   ;;  %v2737_v22 = vld [vmem:[#allocation5 + $0x460] ss:$16 sps:$4 sm:$0xff]  }
  0x8a   :  { %1510 = vmatprep.subr.bf16.mxu0 %v2653_v23  ;;  %1674 = vmatprep.subr.bf16.mxu1 %v2656_v24  ;;  %v2740_v23 = vld [vmem:[#allocation5 + $0x468] ss:$16 sps:$4 sm:$0xff]   ;;  %v2745_v24 = vld [vmem:[#allocation5 + $0x484] ss:$16 sps:$4 sm:$0xff]  }
  0x8d   :  { %1511 = vmatpush1.bf16.msra.mxu0 %v2651_v25  ;;  %1675 = vmatpush1.bf16.msra.mxu1 %v2654_v26  ;;  %v2748_v25 = vld [vmem:[#allocation5 + $0x48c] ss:$16 sps:$4 sm:$0xff]   ;;  %v2743_v26 = vld [vmem:[#allocation5 + $0x480] ss:$16 sps:$4 sm:$0xff]  }
  0x8e   :  { %1512 = vmatprep.subr.bf16.mxu0 %v2659_v27  ;;  %1676 = vmatprep.subr.bf16.mxu1 %v2662_v28  ;;  %v2746_v27 = vld [vmem:[#allocation5 + $0x488] ss:$16 sps:$4 sm:$0xff]   ;;  %v2751_v28 = vld [vmem:[#allocation5 + $0x4a4] ss:$16 sps:$4 sm:$0xff]  }
  0x91   :  { %1513 = vmatpush1.bf16.msra.mxu0 %v2657_v31  ;;  %1677 = vmatpush1.bf16.msra.mxu1 %v2660_v32  ;;  %v2752_v31 = vld [vmem:[#allocation5 + $0x4a8] ss:$16 sps:$4 sm:$0xff]   ;;  %v2757_v32 = vld [vmem:[#allocation5 + $0x4c4] ss:$16 sps:$4 sm:$0xff]  }
  0x92   :  { %1514 = vmatprep.subr.bf16.mxu0 %v2665_v33  ;;  %1678 = vmatprep.subr.bf16.mxu1 %v2668_v34  ;;  %v2760_v33 = vld [vmem:[#allocation5 + $0x4cc] ss:$16 sps:$4 sm:$0xff]   ;;  %v2755_v34 = vld [vmem:[#allocation5 + $0x4c0] ss:$16 sps:$4 sm:$0xff]  }
  0x95   :  { %1515 = vmatpush1.bf16.msra.mxu0 %v2663_v35  ;;  %1679 = vmatpush1.bf16.msra.mxu1 %v2666_v36  ;;  %v2758_v35 = vld [vmem:[#allocation5 + $0x4c8] ss:$16 sps:$4 sm:$0xff]   ;;  %v2763_v36 = vld [vmem:[#allocation5 + $0x4e4] ss:$16 sps:$4 sm:$0xff]  }
  0x96   :  { %1516 = vmatprep.subr.bf16.mxu0 %v2671_v37  ;;  %1680 = vmatprep.subr.bf16.mxu1 %v2674_v38  ;;  %v2766_v37 = vld [vmem:[#allocation5 + $0x4ec] ss:$16 sps:$4 sm:$0xff]   ;;  %v2761_v38 = vld [vmem:[#allocation5 + $0x4e0] ss:$16 sps:$4 sm:$0xff]  }
  0x99   :  { %1517 = vmatpush1.bf16.msra.mxu0 %v2669_v39  ;;  %1681 = vmatpush1.bf16.msra.mxu1 %v2672_v40  ;;  %v2764_v39 = vld [vmem:[#allocation5 + $0x4e8] ss:$16 sps:$4 sm:$0xff]   ;;  %v2769_v40 = vld [vmem:[#allocation5 + $0x504] ss:$16 sps:$4 sm:$0xff]  }
  0x9a   :  { %1518 = vmatprep.subr.bf16.mxu0 %v2677_v41  ;;  %1682 = vmatprep.subr.bf16.mxu1 %v2680_v42  ;;  %v2772_v41 = vld [vmem:[#allocation5 + $0x50c] ss:$16 sps:$4 sm:$0xff]   ;;  %v2767_v42 = vld [vmem:[#allocation5 + $0x500] ss:$16 sps:$4 sm:$0xff]  }
  0x9d   :  { %1519 = vmatpush1.bf16.msra.mxu0 %v2675_v43  ;;  %1683 = vmatpush1.bf16.msra.mxu1 %v2678_v44  ;;  %v2770_v43 = vld [vmem:[#allocation5 + $0x508] ss:$16 sps:$4 sm:$0xff]   ;;  %v2775_v44 = vld [vmem:[#allocation5 + $0x524] ss:$16 sps:$4 sm:$0xff]  }
  0x9e   :  { %1520 = vmatprep.subr.bf16.mxu0 %v2683_v45  ;;  %1684 = vmatprep.subr.bf16.mxu1 %v2686_v46  ;;  %v2778_v45 = vld [vmem:[#allocation5 + $0x52c] ss:$16 sps:$4 sm:$0xff]   ;;  %v2773_v46 = vld [vmem:[#allocation5 + $0x520] ss:$16 sps:$4 sm:$0xff]  }
  0xa1   :  { %1521 = vmatpush1.bf16.msra.mxu0 %v2681_v47  ;;  %1685 = vmatpush1.bf16.msra.mxu1 %v2684_v48  ;;  %v2776_v47 = vld [vmem:[#allocation5 + $0x528] ss:$16 sps:$4 sm:$0xff]   ;;  %v2781_v48 = vld [vmem:[#allocation5 + $0x544] ss:$16 sps:$4 sm:$0xff]  }
  0xa2   :  { %1522 = vmatprep.subr.bf16.mxu0 %v2689_v49  ;;  %1686 = vmatprep.subr.bf16.mxu1 %v2692_v50  ;;  %v2784_v49 = vld [vmem:[#allocation5 + $0x54c] ss:$16 sps:$4 sm:$0xff]   ;;  %v2779_v50 = vld [vmem:[#allocation5 + $0x540] ss:$16 sps:$4 sm:$0xff]  }
  0xa5   :  { %1523 = vmatpush1.bf16.msra.mxu0 %v2687_v51  ;;  %1687 = vmatpush1.bf16.msra.mxu1 %v2690_v52  ;;  %v2782_v51 = vld [vmem:[#allocation5 + $0x548] ss:$16 sps:$4 sm:$0xff]   ;;  %v2787_v52 = vld [vmem:[#allocation5 + $0x564] ss:$16 sps:$4 sm:$0xff]  }
  0xa6   :  { %1524 = vmatprep.subr.bf16.mxu0 %v2695_v53  ;;  %1688 = vmatprep.subr.bf16.mxu1 %v2698_v54  ;;  %v2790_v53 = vld [vmem:[#allocation5 + $0x56c] ss:$16 sps:$4 sm:$0xff]   ;;  %v2785_v54 = vld [vmem:[#allocation5 + $0x560] ss:$16 sps:$4 sm:$0xff]  }
  0xa9   :  { %1525 = vmatpush1.bf16.msra.mxu0 %v2693_v55  ;;  %1689 = vmatpush1.bf16.msra.mxu1 %v2696_v56  ;;  %v2788_v55 = vld [vmem:[#allocation5 + $0x568] ss:$16 sps:$4 sm:$0xff]   ;;  %v2793_v56 = vld [vmem:[#allocation5 + $0x584] ss:$16 sps:$4 sm:$0xff]  }
  0xaa   :  { %1526 = vmatprep.subr.bf16.mxu0 %v2701_v57  ;;  %1690 = vmatprep.subr.bf16.mxu1 %v2704_v58  ;;  %v2796_v57 = vld [vmem:[#allocation5 + $0x58c] ss:$16 sps:$4 sm:$0xff]   ;;  %v2791_v58 = vld [vmem:[#allocation5 + $0x580] ss:$16 sps:$4 sm:$0xff]  }
  0xad   :  { %1527 = vmatpush1.bf16.msra.mxu0 %v2699_v59  ;;  %1691 = vmatpush1.bf16.msra.mxu1 %v2702_v60  ;;  %v2794_v59 = vld [vmem:[#allocation5 + $0x588] ss:$16 sps:$4 sm:$0xff]   ;;  %v2799_v60 = vld [vmem:[#allocation5 + $0x5a4] ss:$16 sps:$4 sm:$0xff]  }
  0xae   :  { %1528 = vmatprep.subr.bf16.mxu0 %v2707_v61  ;;  %1692 = vmatprep.subr.bf16.mxu1 %v2710_v62  ;;  %v2802_v61 = vld [vmem:[#allocation5 + $0x5ac] ss:$16 sps:$4 sm:$0xff]   ;;  %v2797_v62 = vld [vmem:[#allocation5 + $0x5a0] ss:$16 sps:$4 sm:$0xff]  }
  0xb1   :  { %1529 = vmatpush1.bf16.msra.mxu0 %v2705_v63  ;;  %1693 = vmatpush1.bf16.msra.mxu1 %v2708_v0  ;;  %v2800_v63 = vld [vmem:[#allocation5 + $0x5a8] ss:$16 sps:$4 sm:$0xff]   ;;  %v2805_v0 = vld [vmem:[#allocation5 + $0x5c4] ss:$16 sps:$4 sm:$0xff]  }
  0xb2   :  { %1530 = vmatprep.subr.bf16.mxu0 %v2713_v1  ;;  %1694 = vmatprep.subr.bf16.mxu1 %v2716_v2  ;;  %v2808_v1 = vld [vmem:[#allocation5 + $0x5cc] ss:$16 sps:$4 sm:$0xff]   ;;  %v2803_v2 = vld [vmem:[#allocation5 + $0x5c0] ss:$16 sps:$4 sm:$0xff]  }
  0xb5   :  { %1531 = vmatpush1.bf16.msra.mxu0 %v2711_v3  ;;  %1695 = vmatpush1.bf16.msra.mxu1 %v2714_v4  ;;  %v2806_v3 = vld [vmem:[#allocation5 + $0x5c8] ss:$16 sps:$4 sm:$0xff]   ;;  %v2811_v4 = vld [vmem:[#allocation5 + $0x5e4] ss:$16 sps:$4 sm:$0xff]  }
  0xb6   :  { %1541 = vmatprep.subr.bf16.mxu0 %v2721_v5  ;;  %1705 = vmatprep.subr.bf16.mxu1 %v2724_v6  ;;  %v2814_v5 = vld [vmem:[#allocation5 + $0x5ec] ss:$16 sps:$4 sm:$0xff]   ;;  %v2809_v6 = vld [vmem:[#allocation5 + $0x5e0] ss:$16 sps:$4 sm:$0xff]  }
  0xb8   :  { %1533 = vmatmul.mubr.bf16.vlgmr.msra.gmra.mrb[0].mxu0 %v2180_v7  ;;  %1697 = vmatmul.mubr.bf16.vlgmr.msra.gmra.mrb[0].mxu1 %v2180_v7  ;;  %v2812_v7 = vld [vmem:[#allocation5 + $0x5e8] ss:$16 sps:$4 sm:$0xff]  }
  0xb9   :  { %1542 = vmatpush1.bf16.msra.mxu0 %v2719_v8  ;;  %1706 = vmatpush1.bf16.msra.mxu1 %v2722_v9  ;;  %v2819_v8 = vld [vmem:[#allocation5 + $0x604] ss:$16 sps:$4 sm:$0xff]   ;;  %v2822_v9 = vld [vmem:[#allocation5 + $0x60c] ss:$16 sps:$4 sm:$0xff]  }
  0xba   :  { %1543 = vmatprep.subr.bf16.mxu0 %v2727_v10  ;;  %1707 = vmatprep.subr.bf16.mxu1 %v2730_v12  ;;  %v2182_v10 = vcombine.low %v3082_v11, %v3082_v11  ;;  %v2817_v12 = vld [vmem:[#allocation5 + $0x600] ss:$16 sps:$4 sm:$0xff]  }
  0xbb   :  { %1573 = vmatprep.mubr.bf16.mxu0 %v2183_v13  ;;  %1737 = vmatprep.mubr.bf16.mxu1 %v2183_v13  ;;  %v2820_v13 = vld [vmem:[#allocation5 + $0x608] ss:$16 sps:$4 sm:$0xff]   ;;  %v2829_v11 = vld [vmem:[#allocation5 + $0x640] ss:$16 sps:$4 sm:$0xff]  }
  0xbd   :  { %1544 = vmatpush1.bf16.msra.mxu0 %v2725_v14  ;;  %1708 = vmatpush1.bf16.msra.mxu1 %v2728_v15  ;;  %v2825_v14 = vld [vmem:[#allocation5 + $0x624] ss:$16 sps:$4 sm:$0xff]   ;;  %v2828_v15 = vld [vmem:[#allocation5 + $0x62c] ss:$16 sps:$4 sm:$0xff]  }
  0xbe   :  { %1545 = vmatprep.subr.bf16.mxu0 %v2733_v16  ;;  %1709 = vmatprep.subr.bf16.mxu1 %v2736_v17  ;;  %v2823_v16 = vld [vmem:[#allocation5 + $0x620] ss:$16 sps:$4 sm:$0xff]   ;;  %v2826_v17 = vld [vmem:[#allocation5 + $0x628] ss:$16 sps:$4 sm:$0xff]  }
  0xc1   :  { %1546 = vmatpush1.bf16.msra.mxu0 %v2731_v18  ;;  %1710 = vmatpush1.bf16.msra.mxu1 %v2734_v19  ;;  %v2831_v18 = vld [vmem:[#allocation5 + $0x644] ss:$16 sps:$4 sm:$0xff]   ;;  %v2834_v19 = vld [vmem:[#allocation5 + $0x64c] ss:$16 sps:$4 sm:$0xff]  }
  0xc2   :  { %1547 = vmatprep.subr.bf16.mxu0 %v2739_v20  ;;  %1711 = vmatprep.subr.bf16.mxu1 %v2742_v21  ;;  %v3001_v20 = vmov 0   ;;  %v2832_v21 = vld [vmem:[#allocation5 + $0x648] ss:$16 sps:$4 sm:$0xff]  }
  0xc5   :  { %1548 = vmatpush1.bf16.msra.mxu0 %v2737_v22  ;;  %1712 = vmatpush1.bf16.msra.mxu1 %v2740_v23  ;;  %v2837_v22 = vld [vmem:[#allocation5 + $0x664] ss:$16 sps:$4 sm:$0xff]   ;;  %v2840_v23 = vld [vmem:[#allocation5 + $0x66c] ss:$16 sps:$4 sm:$0xff]  }
  0xc6   :  { %1549 = vmatprep.subr.bf16.mxu0 %v2745_v24  ;;  %1713 = vmatprep.subr.bf16.mxu1 %v2748_v25  ;;  %v2835_v24 = vld [vmem:[#allocation5 + $0x660] ss:$16 sps:$4 sm:$0xff]   ;;  %v2838_v25 = vld [vmem:[#allocation5 + $0x668] ss:$16 sps:$4 sm:$0xff]  }
  0xc9   :  { %1550 = vmatpush1.bf16.msra.mxu0 %v2743_v26  ;;  %1714 = vmatpush1.bf16.msra.mxu1 %v2746_v27  ;;  %v2843_v26 = vld [vmem:[#allocation5 + $0x684] ss:$16 sps:$4 sm:$0xff]   ;;  %v2846_v27 = vld [vmem:[#allocation5 + $0x68c] ss:$16 sps:$4 sm:$0xff]  }
  0xca   :  { %1551 = vmatprep.subr.bf16.mxu0 %v2751_v28  ;;  %1715 = vmatprep.subr.bf16.mxu1 %v2754_v29  ;;  %v2841_v28 = vld [vmem:[#allocation5 + $0x680] ss:$16 sps:$4 sm:$0xff]   ;;  %v2844_v29 = vld [vmem:[#allocation5 + $0x688] ss:$16 sps:$4 sm:$0xff]  }
  0xcd   :  { %1552 = vmatpush1.bf16.msra.mxu0 %v2749_v30  ;;  %1716 = vmatpush1.bf16.msra.mxu1 %v2752_v31  ;;  %v2849_v30 = vld [vmem:[#allocation5 + $0x6a4] ss:$16 sps:$4 sm:$0xff]   ;;  %v2852_v31 = vld [vmem:[#allocation5 + $0x6ac] ss:$16 sps:$4 sm:$0xff]  }
  0xce   :  { %1553 = vmatprep.subr.bf16.mxu0 %v2757_v32  ;;  %1717 = vmatprep.subr.bf16.mxu1 %v2760_v33  ;;  %v2847_v32 = vld [vmem:[#allocation5 + $0x6a0] ss:$16 sps:$4 sm:$0xff]   ;;  %v2850_v33 = vld [vmem:[#allocation5 + $0x6a8] ss:$16 sps:$4 sm:$0xff]  }
  0xd1   :  { %1554 = vmatpush1.bf16.msra.mxu0 %v2755_v34  ;;  %1718 = vmatpush1.bf16.msra.mxu1 %v2758_v35  ;;  %v2855_v34 = vld [vmem:[#allocation5 + $0x6c4] ss:$16 sps:$4 sm:$0xff]   ;;  %v2858_v35 = vld [vmem:[#allocation5 + $0x6cc] ss:$16 sps:$4 sm:$0xff]  }
  0xd2   :  { %1555 = vmatprep.subr.bf16.mxu0 %v2763_v36  ;;  %1719 = vmatprep.subr.bf16.mxu1 %v2766_v37  ;;  %v2853_v36 = vld [vmem:[#allocation5 + $0x6c0] ss:$16 sps:$4 sm:$0xff]   ;;  %v2856_v37 = vld [vmem:[#allocation5 + $0x6c8] ss:$16 sps:$4 sm:$0xff]  }
  0xd5   :  { %1556 = vmatpush1.bf16.msra.mxu0 %v2761_v38  ;;  %1720 = vmatpush1.bf16.msra.mxu1 %v2764_v39  ;;  %v2861_v38 = vld [vmem:[#allocation5 + $0x6e4] ss:$16 sps:$4 sm:$0xff]   ;;  %v2864_v39 = vld [vmem:[#allocation5 + $0x6ec] ss:$16 sps:$4 sm:$0xff]  }
  0xd6   :  { %1557 = vmatprep.subr.bf16.mxu0 %v2769_v40  ;;  %1721 = vmatprep.subr.bf16.mxu1 %v2772_v41  ;;  %v2859_v40 = vld [vmem:[#allocation5 + $0x6e0] ss:$16 sps:$4 sm:$0xff]   ;;  %v2862_v41 = vld [vmem:[#allocation5 + $0x6e8] ss:$16 sps:$4 sm:$0xff]  }
  0xd9   :  { %1558 = vmatpush1.bf16.msra.mxu0 %v2767_v42  ;;  %1722 = vmatpush1.bf16.msra.mxu1 %v2770_v43  ;;  %v2866_v42 = vld [vmem:[#allocation7 + $0x40] sm:$0xff]  }
  0xda   :  { %1559 = vmatprep.subr.bf16.mxu0 %v2775_v44  ;;  %1723 = vmatprep.subr.bf16.mxu1 %v2778_v45  ;;  %v2867_v43 = vld [vmem:[#allocation7 + $0xc0] sm:$0xff]   ;;  %v2865_v44 = vld [vmem:[#allocation2 + $0x18] ss:$0 sps:$4 sm:$0xff]  }
  0xdb   :  { %v2868_v45 = vld [vmem:[#allocation7] sm:$0xff]  }
  0xdd   :  { %1560 = vmatpush1.bf16.msra.mxu0 %v2773_v46  ;;  %1724 = vmatpush1.bf16.msra.mxu1 %v2776_v47  ;;  %v2869_v46 = vld [vmem:[#allocation7 + $0x80] sm:$0xff]   ;;  %v2870_v47 = vld [vmem:[#allocation7 + $0x48] sm:$0xff]  }
  0xde   :  { %1561 = vmatprep.subr.bf16.mxu0 %v2781_v48  ;;  %1725 = vmatprep.subr.bf16.mxu1 %v2784_v49  ;;  %v2871_v48 = vld [vmem:[#allocation7 + $0xc8] sm:$0xff]  }
  0xdf   :  { %v2872_v49 = vld [vmem:[#allocation7 + $0x8] sm:$0xff]  }
  0xe1   :  { %1562 = vmatpush1.bf16.msra.mxu0 %v2779_v50  ;;  %1726 = vmatpush1.bf16.msra.mxu1 %v2782_v51  ;;  %v2873_v50 = vld [vmem:[#allocation7 + $0x88] sm:$0xff]   ;;  %v2874_v51 = vld [vmem:[#allocation7 + $0x50] sm:$0xff]  }
  0xe2   :  { %1563 = vmatprep.subr.bf16.mxu0 %v2787_v52  ;;  %1727 = vmatprep.subr.bf16.mxu1 %v2790_v53  ;;  %v2875_v52 = vld [vmem:[#allocation7 + $0xd0] sm:$0xff]  }
  0xe3   :  { %v2876_v53 = vld [vmem:[#allocation7 + $0x10] sm:$0xff]  }
  0xe5   :  { %1564 = vmatpush1.bf16.msra.mxu0 %v2785_v54  ;;  %1728 = vmatpush1.bf16.msra.mxu1 %v2788_v55  ;;  %v2877_v54 = vld [vmem:[#allocation7 + $0x90] sm:$0xff]   ;;  %v2878_v55 = vld [vmem:[#allocation7 + $0x58] sm:$0xff]  }
  0xe6   :  { %1565 = vmatprep.subr.bf16.mxu0 %v2793_v56  ;;  %1729 = vmatprep.subr.bf16.mxu1 %v2796_v57  ;;  %v2879_v56 = vld [vmem:[#allocation7 + $0xd8] sm:$0xff]  }
  0xe7   :  { %v2880_v57 = vld [vmem:[#allocation7 + $0x18] sm:$0xff]  }
  0xe9   :  { %1566 = vmatpush1.bf16.msra.mxu0 %v2791_v58  ;;  %1730 = vmatpush1.bf16.msra.mxu1 %v2794_v59  ;;  %v2881_v58 = vld [vmem:[#allocation7 + $0x98] sm:$0xff]   ;;  %v2882_v59 = vld [vmem:[#allocation7 + $0x60] sm:$0xff]  }
  0xea   :  { %1567 = vmatprep.subr.bf16.mxu0 %v2799_v60  ;;  %1731 = vmatprep.subr.bf16.mxu1 %v2802_v61  ;;  %v2883_v60 = vld [vmem:[#allocation7 + $0xe0] sm:$0xff]  }
  0xeb   :  { %v2884_v61 = vld [vmem:[#allocation7 + $0x20] sm:$0xff]  }
  0xed   :  { %1568 = vmatpush1.bf16.msra.mxu0 %v2797_v62  ;;  %1732 = vmatpush1.bf16.msra.mxu1 %v2800_v63  ;;  %v2885_v62 = vld [vmem:[#allocation7 + $0xa0] sm:$0xff]   ;;  %v2886_v63 = vld [vmem:[#allocation7 + $0x68] sm:$0xff]  }
  0xee   :  { %1569 = vmatprep.subr.bf16.mxu0 %v2805_v0  ;;  %1733 = vmatprep.subr.bf16.mxu1 %v2808_v1  ;;  %v2887_v0 = vld [vmem:[#allocation7 + $0xe8] sm:$0xff]  }
  0xef   :  { %v2888_v1 = vld [vmem:[#allocation7 + $0x28] sm:$0xff]  }
  0xf1   :  { %1570 = vmatpush1.bf16.msra.mxu0 %v2803_v2  ;;  %1734 = vmatpush1.bf16.msra.mxu1 %v2806_v3  ;;  %v2889_v2 = vld [vmem:[#allocation7 + $0xa8] sm:$0xff]   ;;  %v2890_v3 = vld [vmem:[#allocation7 + $0x70] sm:$0xff]  }
  0xf2   :  { %1571 = vmatprep.subr.bf16.mxu0 %v2811_v4  ;;  %1735 = vmatprep.subr.bf16.mxu1 %v2814_v5  ;;  %v2891_v4 = vld [vmem:[#allocation7 + $0xf0] sm:$0xff]  }
  0xf3   :  { %v2892_v5 = vld [vmem:[#allocation7 + $0x30] sm:$0xff]  }
  0xf5   :  { %1572 = vmatpush1.bf16.msra.mxu0 %v2809_v6  ;;  %1736 = vmatpush1.bf16.msra.mxu1 %v2812_v7  ;;  %v2893_v6 = vld [vmem:[#allocation7 + $0xb0] sm:$0xff]   ;;  %v2894_v7 = vld [vmem:[#allocation7 + $0x78] sm:$0xff]  }
  0xf6   :  { %1582 = vmatprep.subr.bf16.mxu0 %v2819_v8  ;;  %1746 = vmatprep.subr.bf16.mxu1 %v2822_v9  ;;  %v2895_v8 = vld [vmem:[#allocation7 + $0xf8] sm:$0xff]  }
  0xf7   :  { %v2896_v9 = vld [vmem:[#allocation7 + $0x38] sm:$0xff]  }
  0xf8   :  { %1574 = vmatmul.mubr.bf16.vlgmr.msra.gmra.mrb[0].mxu0 %v2182_v10  ;;  %1738 = vmatmul.mubr.bf16.vlgmr.msra.gmra.mrb[0].mxu1 %v2182_v10  ;;  %v2897_v10 = vld [vmem:[#allocation7 + $0xb8] sm:$0xff]  }
  0xf9   :  { %1583 = vmatpush1.bf16.msra.mxu0 %v2817_v12  ;;  %1747 = vmatpush1.bf16.msra.mxu1 %v2820_v13  ;;  %v294_v12 = vlaneseq }
  0xfa   :  { %1584 = vmatprep.subr.bf16.mxu0 %v2825_v14  ;;  %1748 = vmatprep.subr.bf16.mxu1 %v2828_v15 }
  0xfb   :  { %1614 = vmatprep.mubr.bf16.mxu0 %v3001_v20  ;;  %1778 = vmatprep.mubr.bf16.mxu1 %v3001_v20  ;;  %v295_v13 = vshrl.u32 %v294_v12, 7 }
  0xfd   :  { %1585 = vmatpush1.bf16.msra.mxu0 %v2823_v16  ;;  %1749 = vmatpush1.bf16.msra.mxu1 %v2826_v17  ;;  %v296_v14 = vsub.s32 0, %v295_v13  ;;  %v304_v15 = vsub.s32 2, %v295_v13  ;;  %v292_v16 = vld [vmem:[%s3112_s2] sm:$0xf]  ;;  %v300_v17 = vsub.s32 1, %v295_v13 }
  0xfe   :  { %1586 = vmatprep.subr.bf16.mxu0 %v2831_v18  ;;  %1750 = vmatprep.subr.bf16.mxu1 %v2834_v19  ;;  %v308_v18 = vsub.s32 3, %v295_v13 }
  0xff   :  { %v297_v19 = vrot.slane %v292_v16, %v296_v14  ;;  %v305_v20 = vrot.slane %v292_v16, %v304_v15 }
 0x101   :  { %1587 = vmatpush1.bf16.msra.mxu0 %v2829_v11  ;;  %1751 = vmatpush1.bf16.msra.mxu1 %v2832_v21  ;;  %v301_v11 = vrot.slane %v292_v16, %v300_v17  ;;  %v309_v21 = vrot.slane %v292_v16, %v308_v18 }
 0x102   :  { %1588 = vmatprep.subr.bf16.mxu0 %v2837_v22  ;;  %1752 = vmatprep.subr.bf16.mxu1 %v2840_v23 }
 0x105   :  { %1589 = vmatpush1.bf16.msra.mxu0 %v2835_v24  ;;  %1753 = vmatpush1.bf16.msra.mxu1 %v2838_v25 }
 0x106   :  { %1590 = vmatprep.subr.bf16.mxu0 %v2843_v26  ;;  %1754 = vmatprep.subr.bf16.mxu1 %v2846_v27 }
 0x109   :  { %1591 = vmatpush1.bf16.msra.mxu0 %v2841_v28  ;;  %1755 = vmatpush1.bf16.msra.mxu1 %v2844_v29 }
 0x10a   :  { %1592 = vmatprep.subr.bf16.mxu0 %v2849_v30  ;;  %1756 = vmatprep.subr.bf16.mxu1 %v2852_v31 }
 0x10d   :  { %1593 = vmatpush1.bf16.msra.mxu0 %v2847_v32  ;;  %1757 = vmatpush1.bf16.msra.mxu1 %v2850_v33 }
 0x10e   :  { %1594 = vmatprep.subr.bf16.mxu0 %v2855_v34  ;;  %1758 = vmatprep.subr.bf16.mxu1 %v2858_v35 }
 0x111   :  { %1595 = vmatpush1.bf16.msra.mxu0 %v2853_v36  ;;  %1759 = vmatpush1.bf16.msra.mxu1 %v2856_v37 }
 0x112   :  { %1596 = vmatprep.subr.bf16.mxu0 %v2861_v38  ;;  %1760 = vmatprep.subr.bf16.mxu1 %v2864_v39 }
 0x115   :  { %1597 = vmatpush1.bf16.msra.mxu0 %v2859_v40  ;;  %1761 = vmatpush1.bf16.msra.mxu1 %v2862_v41 }
 0x116   :  { %2442 = vmatprep.subr.bf16.mxu0 %v2866_v42  ;;  %2464 = vmatprep.subr.bf16.mxu1 %v2867_v43 }
 0x118   :  { %1615 = vmatmul.mubr.bf16.vlgmr.msra.gmra.mrb[0].mxu0 %v2865_v44  ;;  %1779 = vmatmul.mubr.bf16.vlgmr.msra.gmra.mrb[0].mxu1 %v2865_v44  ;;  %v2409_v44 = vld [vmem:[%s3114_s4] ss:$0 sm:$0xff] }
 0x119   :  { %2443 = vmatpush3.bf16.msra.mxu0 %v2868_v45  ;;  %2465 = vmatpush3.bf16.msra.mxu1 %v2869_v46 }
 0x11a   :  { %2444 = vmatprep.subr.bf16.mxu0 %v2870_v47  ;;  %2466 = vmatprep.subr.bf16.mxu1 %v2871_v48 }
 0x11d   :  { %2445 = vmatpush3.bf16.msra.mxu0 %v2872_v49  ;;  %2467 = vmatpush3.bf16.msra.mxu1 %v2873_v50 }
 0x11e   :  { %2446 = vmatprep.subr.bf16.mxu0 %v2874_v51  ;;  %2468 = vmatprep.subr.bf16.mxu1 %v2875_v52 }
 0x121   :  { %2447 = vmatpush3.bf16.msra.mxu0 %v2876_v53  ;;  %2469 = vmatpush3.bf16.msra.mxu1 %v2877_v54 }
 0x122   :  { %2448 = vmatprep.subr.bf16.mxu0 %v2878_v55  ;;  %2470 = vmatprep.subr.bf16.mxu1 %v2879_v56 }
 0x125   :  { %2449 = vmatpush3.bf16.msra.mxu0 %v2880_v57  ;;  %2471 = vmatpush3.bf16.msra.mxu1 %v2881_v58 }
 0x126   :  { %2450 = vmatprep.subr.bf16.mxu0 %v2882_v59  ;;  %2472 = vmatprep.subr.bf16.mxu1 %v2883_v60  ;;  %v2147_v59 = vand.u32 127, %v294_v12 }
 0x128   :  { %vm2148_vm0 = vcmp.lt.s32.totalorder %v2147_v59, 2  ;;  %vm2158_vm1 = vcmp.eq.s32.totalorder %v2147_v59, 2 }
 0x129   :  { %2451 = vmatpush3.bf16.msra.mxu0 %v2884_v61  ;;  %2473 = vmatpush3.bf16.msra.mxu1 %v2885_v62 }
 0x12a   :  { %2452 = vmatprep.subr.bf16.mxu0 %v2886_v63  ;;  %2474 = vmatprep.subr.bf16.mxu1 %v2887_v0 }
 0x12d   :  { %2453 = vmatpush3.bf16.msra.mxu0 %v2888_v1  ;;  %2475 = vmatpush3.bf16.msra.mxu1 %v2889_v2  ;;  %v2143_v2 = vld [vmem:[%s3115_s5] sm:$0xff] }
 0x12e   :  { %2454 = vmatprep.subr.bf16.mxu0 %v2890_v3  ;;  %2476 = vmatprep.subr.bf16.mxu1 %v2891_v4 }
 0x131   :  { %2455 = vmatpush3.bf16.msra.mxu0 %v2892_v5  ;;  %2477 = vmatpush3.bf16.msra.mxu1 %v2893_v6 }
 0x132   :  { %2456 = vmatprep.subr.bf16.mxu0 %v2894_v7  ;;  %2478 = vmatprep.subr.bf16.mxu1 %v2895_v8 }
 0x135   :  { %2457 = vmatpush3.bf16.msra.mxu0 %v2896_v9  ;;  %2479 = vmatpush3.bf16.msra.mxu1 %v2897_v10 }
 0x1eb   :  { %v1616_v22 = vpop.f32.mrb[0].mxu0  ;;  %v1780_v23 = vpop.f32.mrb[0].mxu1 }
 0x1ec   :  { %v2486_v24 = vadd.f32 %v1616_v22, %v297_v19  ;;  %v2488_v25 = vadd.f32 %v1780_v23, %v305_v20  ;;  %v1618_v26 = vpop.f32.mrb[1].mxu0  ;;  %v1782_v27 = vpop.f32.mrb[1].mxu1 }
 0x1ed   :  { %v2487_v28 = vadd.f32 %v1618_v26, %v301_v11  ;;  %v2489_v29 = vadd.f32 %v1782_v27, %v309_v21  ;;  %v1620_v30 = vpop.f32.mrb[2].mxu0  ;;  %v1784_v31 = vpop.f32.mrb[2].mxu1 }
 0x1ee   :  { %v1787_v32 = vmax.f32 %v2486_v24, 0.0  ;;  %v1789_v33 = vmax.f32 %v2488_v25, 0.0  ;;  %v1621_v34 = vpop.f32.mrb[3].mxu0  ;;  %v1785_v35 = vpop.f32.mrb[3].mxu1 }
 0x1ef   :  { %v1788_v36 = vmax.f32 %v2487_v28, 0.0  ;;  %v1790_v37 = vmax.f32 %v2489_v29, 0.0 }
 0x1f0   :  { %v1791_v40 = vpack.c.bf16 %v1787_v32, %v1787_v32  ;;  %v1793_v41 = vpack.c.bf16 %v1789_v33, %v1789_v33 }
 0x1f1   :  { %v1792_v38 = vpack.c.bf16 %v1788_v36, %v1788_v36  ;;  %v1794_v39 = vpack.c.bf16 %v1790_v37, %v1790_v37 }
 0x1f3   :  { %2090 = vmatprep.mubr.bf16.mxu0 %v1792_v38  ;;  %2130 = vmatprep.mubr.bf16.mxu1 %v1794_v39 }
 0x1f4   :  { %2091 = vmatmul.mubr.bf16.vlgmr.msra.gmra.mrb[4].mxu0 %v1791_v40  ;;  %2131 = vmatmul.mubr.bf16.vlgmr.msra.gmra.mrb[4].mxu1 %v1793_v41 }
 0x2c7   :  { %v2458_v42 = vpop.f32.mrb[4].mxu0  ;;  %v2480_v43 = vpop.f32.mrb[4].mxu1 }
 0x2c8   :  { %v2459_v45 = vpop.f32.mrb[5].mxu0  ;;  %v2481_v46 = vpop.f32.mrb[5].mxu1 }
 0x2c9   :  { %v2460_v47 = vadd.f32 %v2459_v45, %v2458_v42  ;;  %v2482_v48 = vadd.f32 %v2481_v46, %v2480_v43  ;;  %v2461_v49 = vpop.f32.mrb[6].mxu0  ;;  %v2483_v50 = vpop.f32.mrb[6].mxu1 }
 0x2ca   :  { %v2462_v51 = vpop.f32.mrb[7].mxu0  ;;  %v2484_v52 = vpop.f32.mrb[7].mxu1 }
 0x2cb   :  { %v2093_v53 = vadd.f32 %v2460_v47, %v2409_v44 }
 0x2cd   :  { %v2133_v54 = vadd.f32 %v2482_v48, %v2093_v53 }
 0x2cf   :  { %2138 = vrot.lane.b32.xlu0 %v2133_v54, %s2999_s0  ;;  %v2152_v63 = vmul.f32 %v2133_v54, %v2133_v54 }
 0x341   :  { %v2139_v55 = vpop.permute.xlu0 %2138 }
 0x342   :  { %v2140_v56 = vmul.f32 1.442695, %v2139_v55  ;;  %v2149_v57 = vmul.f32 2.0, %v2139_v55 }
 0x344   :  { %2898 = vpow2.f32 %v2140_v56  ;;  %v2150_v61 = vadd.f32 1.0, %v2149_v57 }
 0x34e   :  { %v2899_v58 = vpop.eup %2898 }
 0x34f   :  { %v2142_v60 = vmul.f32 %v2899_v58, %v2899_v58  ;;  %v2144_v3 = vmul.f32 %v2899_v58, %v2143_v2 }
 0x351   :  { %v2151_v62 = vsub.f32 %v2150_v61, %v2142_v60  ;;  %v2145_v6 = vadd.f32 %v2144_v3, %v2133_v54 }
 0x353   :  { %v2153_v0 = vsub.f32 %v2151_v62, %v2152_v63 }
 0x355   :  { %v2154_v1 = vsel %vm2148_vm0, %v2153_v0, 0.0 }
 0x356   :  { %2155 = vadd.xlane.f32.xlu0 %v2154_v1 }
 0x3e3   :  { %v2156_v4 = vpop.xlane.xlu0 %2155 }
 0x3e4   :  { %v2157_v5 = vmul.f32 -0.5, %v2156_v4 }
 0x3e6   :  { %v2159_v7 = vsel %vm2158_vm1, %v2157_v5, 0.0 }
 0x3e7   :  { %v2160_v8 = vsel %vm2148_vm0, %v2145_v6, %v2159_v7 }
 0x3e8   :  { %2161 = vst [vmem:[#allocation8] sm:$0xff] %v2160_v8 }
 0x3e9   :  { %2977 = shalt.err (!%p2974_p0)
}
 0x3ea   :  { %s2978_s18 = scalar_lea.hbm %s3116_s6, 128 }
 0x3eb   :  { %p2979_p1 = scmp.ne.s32.totalorder %s3116_s6, %s2978_s18  ;;  %p2982_p2 = scmp.lt.u32.totalorder %s2978_s18, %s3116_s6 }
 0x3ed   :  { %p2984_p3 = pnand %p2982_p2, %p2979_p1 }
 0x3ef   :  { %2987 = shalt.err (!%p2984_p3)
}
 0x3f0   :  { %2171 = dma.vmem_to_hbm [thread:$0]  %s2169_s15, 128, %s3116_s6, [#allocation4]  }
 0x3f1   :  { %2992 = dma.done.wait [#allocation4], 128  }
 0x3f2   :  { %2993 = vsyncadd [#allocation4], 4294967168 }
 0x3f3   :  { %2175 = vsyncpa [#allocation3], 1 }
 0x3f4   :  { %2176 = vsyncpa [#allocation6], 1 }
 0x3f5   :  { %2177 = vsyncpa [#allocation4], 1 }

</bundles_post_ra>
